<compile_context>
chip_gen: v6e
topology: v6e:2x2x1
jax: 0.10.0
libtpu: 0.0.40
codegen_flags: <defaults>
</compile_context>

<pallas_src>
import jax
import jax.numpy as jnp
from jax.experimental import pallas as pl
from jax.experimental.pallas import tpu as pltpu


# ----------------------------- small helpers --------------------------------

def _round_up(x: int, m: int) -> int:
    return (x + m - 1) // m * m


def _pad2(a, rows: int, cols: int):
    r, c = a.shape
    if r == rows and c == cols:
        return a
    return jnp.pad(a, ((0, rows - r), (0, cols - c)))


def _sublane(dtype) -> int:
    # packed sublane multiple: 8 for 4-byte, 16 for 2-byte, 32 for 1-byte dtypes
    return max(8, 32 // jnp.dtype(dtype).itemsize)


def _largest_128_divisor(dp: int, cap: int) -> int:
    """Largest multiple of 128 that divides dp and is <= cap (dp % 128 == 0)."""
    best = 128
    t = 128
    while t <= min(dp, cap):
        if dp % t == 0:
            best = t
        t += 128
    return best


def _vmem_cap_bytes() -> int:
    """Scoped-VMEM cap: ~48 MiB on 64 MiB parts (v7x), ~100 MiB on 128 MiB parts."""
    try:
        phys = pltpu.get_tpu_info().vmem_capacity_bytes
    except Exception:
        phys = 64 << 20  # be conservative (v7x-sized) if the query fails
    return (100 << 20) if phys >= (128 << 20) else (48 << 20)


# ------------------------------- kernels -------------------------------------

def _mlp_kernel_resident(x_ref, w0t_ref, w1t_ref, o_ref):
    """Grid = (batch tiles,).  Both (Dp, Dp) weights are VMEM-resident."""
    h = jnp.dot(x_ref[...], w0t_ref[...], preferred_element_type=jnp.float32)
    h = jnp.maximum(h, 0.0).astype(w1t_ref.dtype)            # ReLU on f32 acc
    y = jnp.dot(h, w1t_ref[...], preferred_element_type=jnp.float32)
    o_ref[...] = y.astype(o_ref.dtype)


def _mlp_kernel_streamed(x_ref, w0t_ref, w1t_ref, o_ref, h_ref):
    """Grid = (batch tiles, lin1 column tiles).  h persists across j (arbitrary)."""
    j = pl.program_id(1)

    @pl.when(j == 0)
    def _():
        h = jnp.dot(x_ref[...], w0t_ref[...], preferred_element_type=jnp.float32)
        h_ref[...] = jnp.maximum(h, 0.0).astype(h_ref.dtype)  # stored in compute dtype

    y = jnp.dot(h_ref[...], w1t_ref[...], preferred_element_type=jnp.float32)
    o_ref[...] = y.astype(o_ref.dtype)


# --------------------------- parameter preparation ---------------------------

def prepare_mlp_params(w0, w1, *, compute_dtype=jnp.bfloat16):
    """One-time prep of PyTorch nn.Linear (out, in) weights:
    transpose to (in, out), zero-pad feature dims to a multiple of 128, cast to
    the MXU compute dtype.  Do this ONCE and reuse across forward calls."""
    d_model = w0.shape[0]
    assert w0.shape == (d_model, d_model) and w1.shape == (d_model, d_model)
    dp = _round_up(d_model, 128)
    w0t_p = _pad2(w0.T, dp, dp).astype(compute_dtype)
    w1t_p = _pad2(w1.T, dp, dp).astype(compute_dtype)
    return w0t_p, w1t_p, d_model


# -------------------------------- forward ------------------------------------

def mlp_forward_prepared(x, w0t_p, w1t_p, d_model, *, tm=256, tn_cap=512):
    """y = relu(x @ w0.T) @ w1.T with pre-prepared (in,out)-layout padded weights."""
    B, D = x.shape
    assert D == d_model
    Dp = w0t_p.shape[0]
    assert w0t_p.shape == (Dp, Dp) and w1t_p.shape == (Dp, Dp)
    compute_dtype = w0t_p.dtype
    out_dtype = x.dtype
    itm = jnp.dtype(compute_dtype).itemsize
    otm = jnp.dtype(out_dtype).itemsize

    # batch tile: dtype-aligned sublane multiple (8 f32 / 16 bf16 / 32 fp8)
    sub = _sublane(compute_dtype)
    tm = _round_up(min(tm, _round_up(B, sub)), sub)
    Bp = _round_up(B, tm)
    x_p = _pad2(x, Bp, Dp).astype(compute_dtype)

    vmem_cap = _vmem_cap_bytes()
    headroom = 4 << 20

    cost = pl.CostEstimate(
        flops=4 * Bp * Dp * Dp,            # two (Bp,Dp) x (Dp,Dp) matmuls
        transcendentals=0,
        bytes_accessed=(Bp * Dp + 2 * Dp * Dp) * itm + Bp * Dp * otm,
    )

    # ---- plan A: both weights VMEM-resident, 1-D grid over batch tiles -----
    resident_need = (2 * Dp * Dp * itm      # w0t + w1t (single-buffered)
                     + 2 * tm * Dp * itm    # x tile, double-buffered
                     + 2 * tm * Dp * otm)   # out tile, double-buffered
    if resident_need + headroom <= vmem_cap:
        vmem_limit = min(max(resident_need + headroom, 16 << 20), vmem_cap)

        def call_resident(single_buffer_weights):
            def w_spec():
                if single_buffer_weights:
                    # constant-index block: second pipeline buffer is pure waste
                    return pl.BlockSpec((Dp, Dp), lambda i: (0, 0),
                                        pipeline_mode=pl.Buffered(1))
                return pl.BlockSpec((Dp, Dp), lambda i: (0, 0))
            return pl.pallas_call(
                _mlp_kernel_resident,
                out_shape=jax.ShapeDtypeStruct((Bp, Dp), out_dtype),
                grid=(Bp // tm,),
                in_specs=[pl.BlockSpec((tm, Dp), lambda i: (i, 0)),
                          w_spec(), w_spec()],
                out_specs=pl.BlockSpec((tm, Dp), lambda i: (i, 0)),
                compiler_params=pltpu.CompilerParams(
                    dimension_semantics=("parallel",),
                    vmem_limit_bytes=vmem_limit),
                cost_estimate=cost,
            )(x_p, w0t_p, w1t_p)

        try:
            out_p = call_resident(True)
        except Exception:
            # pipeline_mode=pl.Buffered(1) unsupported on this jax version ->
            # fall back to default double buffering (extra VMEM only).
            out_p = call_resident(False)
        return out_p[:B, :D]

    # ---- plan B: w0t resident, w1t streamed as column tiles, 2-D grid ------
    # TODO(synk): for Dp where a single (Dp, Dp) weight exceeds VMEM, a K-tiled
    # lin0 (pltpu.emit_pipeline / reduction grid axis) is required.
    tn = _largest_128_divisor(Dp, tn_cap)
    streamed_need = (Dp * Dp * itm          # w0t (single-buffered)
                     + 3 * Dp * tn * itm    # w1t column tiles, 3-deep
                     + 2 * tm * Dp * itm    # x tile, double-buffered
                     + 2 * tm * tn * otm    # out tile, double-buffered
                     + tm * Dp * itm)       # h scratch (compute dtype)
    vmem_limit = min(max(streamed_need + headroom, 16 << 20), vmem_cap)

    def call_streamed(use_pipeline_mode):
        if use_pipeline_mode:
            w0_spec = pl.BlockSpec((Dp, Dp), lambda i, j: (0, 0),
                                   pipeline_mode=pl.Buffered(1))
            w1_spec = pl.BlockSpec((Dp, tn), lambda i, j: (0, j),
                                   pipeline_mode=pl.Buffered(3))
        else:
            w0_spec = pl.BlockSpec((Dp, Dp), lambda i, j: (0, 0))
            w1_spec = pl.BlockSpec((Dp, tn), lambda i, j: (0, j))
        return pl.pallas_call(
            _mlp_kernel_streamed,
            out_shape=jax.ShapeDtypeStruct((Bp, Dp), out_dtype),
            grid=(Bp // tm, Dp // tn),
            in_specs=[pl.BlockSpec((tm, Dp), lambda i, j: (i, 0)),
                      w0_spec, w1_spec],
            out_specs=pl.BlockSpec((tm, tn), lambda i, j: (i, j)),
            scratch_shapes=[pltpu.VMEM((tm, Dp), compute_dtype)],
            compiler_params=pltpu.CompilerParams(
                dimension_semantics=("parallel", "arbitrary"),
                vmem_limit_bytes=vmem_limit),
            cost_estimate=cost,
        )(x_p, w0t_p, w1t_p)

    try:
        out_p = call_streamed(True)
    except Exception:
        out_p = call_streamed(False)
    return out_p[:B, :D]


def mlp_forward(x, w0, w1, *, compute_dtype=jnp.bfloat16, tm=256, tn_cap=512):
    """Convenience wrapper with raw nn.Linear (out,in) weights.  For repeated
    calls, run prepare_mlp_params once and call mlp_forward_prepared instead."""
    w0t_p, w1t_p, d_model = prepare_mlp_params(w0, w1, compute_dtype=compute_dtype)
    return mlp_forward_prepared(x, w0t_p, w1t_p, d_model, tm=tm, tn_cap=tn_cap)


# --------------------------------- test ---------------------------------------

def reference_mlp(x, w0, w1):
    h = jnp.maximum(x @ w0.T, 0.0)
    return h @ w1.T


if __name__ == "__main__":
    d_model = 32
    batch = 8

    key = jax.random.PRNGKey(0)
    kx, k0, k1 = jax.random.split(key, 3)

    # Deterministic synthetic params, same shapes as nn.Linear(d_model, d_model).
    bound = 1.0 / (d_model ** 0.5)
    x = jax.random.normal(kx, (batch, d_model), dtype=jnp.float32)
    w0 = jax.random.uniform(k0, (d_model, d_model), dtype=jnp.float32,
                            minval=-bound, maxval=bound)
    w1 = jax.random.uniform(k1, (d_model, d_model), dtype=jnp.float32,
                            minval=-bound, maxval=bound)

    y_ref = reference_mlp(x, w0, w1)

    # f32-operand path: exact zero padding, tight tolerance.
    w0t_f32, w1t_f32, dm = prepare_mlp_params(w0, w1, compute_dtype=jnp.float32)
    y_f32 = mlp_forward_prepared(x, w0t_f32, w1t_f32, dm)
    jax.block_until_ready(y_f32)
    assert y_f32.shape == (batch, d_model)
    assert jnp.allclose(y_f32, y_ref, atol=1e-5, rtol=1e-5), "f32 path mismatch"

    # default bf16-MXU path (f32 accumulation): looser tolerance.
    w0t_p, w1t_p, dm = prepare_mlp_params(w0, w1)  # bf16 default
    y_bf16 = mlp_forward_prepared(x, w0t_p, w1t_p, dm)
    jax.block_until_ready(y_bf16)
    assert y_bf16.shape == (batch, d_model)
    assert jnp.allclose(y_bf16, y_ref, atol=5e-2, rtol=5e-2), "bf16 path mismatch"

    print("KERNEL_OK")
</pallas_src>

<mosaic_0001>
module attributes {stable_mosaic.version = 11 : i64} {
  func.func @_mlp_kernel_resident(%arg0: i32, %arg1: memref<8x128xf32, #tpu.memory_space<vmem>>, %arg2: memref<128x128xf32, #tpu.memory_space<vmem>>, %arg3: memref<128x128xf32, #tpu.memory_space<vmem>>, %arg4: memref<8x128xf32, #tpu.memory_space<vmem>>) attributes {dimension_semantics = [#tpu.dimension_semantics<parallel>], iteration_bounds = array<i64: 1>, scalar_prefetch = 0 : i64, scratch_operands = 0 : i64, tpu.core_type = #tpu.core_type<tc>, window_params = [{transform_indices = @transform_0, window_bounds = array<i64: 8, 128>}, {pipeline_mode = #tpu.pipeline_mode<synchronous>, transform_indices = @transform_1, window_bounds = array<i64: 128, 128>}, {pipeline_mode = #tpu.pipeline_mode<synchronous>, transform_indices = @transform_2, window_bounds = array<i64: 128, 128>}, {transform_indices = @transform_3, window_bounds = array<i64: 8, 128>}]} {
    %c0 = arith.constant 0 : index
    %c0_0 = arith.constant 0 : index
    %0 = vector.load %arg1[%c0, %c0_0] : memref<8x128xf32, #tpu.memory_space<vmem>>, vector<8x128xf32>
    %c0_1 = arith.constant 0 : index
    %c0_2 = arith.constant 0 : index
    %1 = vector.load %arg2[%c0_1, %c0_2] : memref<128x128xf32, #tpu.memory_space<vmem>>, vector<128x128xf32>
    %cst = arith.constant dense<0.000000e+00> : vector<8x128xf32>
    %2 = tpu.matmul %0, %1, %cst {dimension_numbers = #tpu.dot_dimension_numbers<[1], [0], [0], [1], [0, 0, 1, 1], [], []>} : vector<8x128xf32>, vector<128x128xf32>, vector<8x128xf32> -> vector<8x128xf32>
    %cst_3 = arith.constant 0.000000e+00 : f32
    %3 = vector.broadcast %cst_3 : f32 to vector<8x128xf32>
    %4 = arith.maximumf %2, %3 : vector<8x128xf32>
    %c0_4 = arith.constant 0 : index
    %c0_5 = arith.constant 0 : index
    %5 = vector.load %arg3[%c0_4, %c0_5] : memref<128x128xf32, #tpu.memory_space<vmem>>, vector<128x128xf32>
    %cst_6 = arith.constant dense<0.000000e+00> : vector<8x128xf32>
    %6 = tpu.matmul %4, %5, %cst_6 {dimension_numbers = #tpu.dot_dimension_numbers<[1], [0], [0], [1], [0, 0, 1, 1], [], []>} : vector<8x128xf32>, vector<128x128xf32>, vector<8x128xf32> -> vector<8x128xf32>
    %c0_7 = arith.constant 0 : index
    %c0_8 = arith.constant 0 : index
    %7 = vector.load %arg4[%c0_7, %c0_8] : memref<8x128xf32, #tpu.memory_space<vmem>>, vector<8x128xf32>
    tpu.vector_store %arg4[%c0_7, %c0_8], %6 {strides = array<i32>} : memref<8x128xf32, #tpu.memory_space<vmem>>, vector<8x128xf32>,
    return
  }
  func.func @transform_0(%arg0: i32) -> (i32, i32) {
    %c0_i32 = arith.constant 0 : i32
    %c0_i32_0 = arith.constant 0 : i32
    return %arg0, %c0_i32 : i32, i32
  }
  func.func @transform_1(%arg0: i32) -> (i32, i32) {
    %c0_i32 = arith.constant 0 : i32
    %c0_i32_0 = arith.constant 0 : i32
    %c0_i32_1 = arith.constant 0 : i32
    return %c0_i32, %c0_i32_0 : i32, i32
  }
  func.func @transform_2(%arg0: i32) -> (i32, i32) {
    %c0_i32 = arith.constant 0 : i32
    %c0_i32_0 = arith.constant 0 : i32
    %c0_i32_1 = arith.constant 0 : i32
    return %c0_i32, %c0_i32_0 : i32, i32
  }
  func.func @transform_3(%arg0: i32) -> (i32, i32) {
    %c0_i32 = arith.constant 0 : i32
    %c0_i32_0 = arith.constant 0 : i32
    return %arg0, %c0_i32 : i32, i32
  }
}

module attributes {stable_mosaic.version = 11 : i64} {
  func.func @_mlp_kernel_resident(%arg0: i32, %arg1: memref<8x128xf32, #tpu.memory_space<vmem>>, %arg2: memref<128x128xf32, #tpu.memory_space<vmem>>, %arg3: memref<128x128xf32, #tpu.memory_space<vmem>>, %arg4: memref<8x128xf32, #tpu.memory_space<vmem>>) attributes {dimension_semantics = [#tpu.dimension_semantics<parallel>], iteration_bounds = array<i64: 1>, scalar_prefetch = 0 : i64, scratch_operands = 0 : i64, tpu.core_type = #tpu.core_type<tc>, window_params = [{transform_indices = @transform_0, window_bounds = array<i64: 8, 128>}, {pipeline_mode = #tpu.pipeline_mode<synchronous>, transform_indices = @transform_1, window_bounds = array<i64: 128, 128>}, {pipeline_mode = #tpu.pipeline_mode<synchronous>, transform_indices = @transform_2, window_bounds = array<i64: 128, 128>}, {transform_indices = @transform_3, window_bounds = array<i64: 8, 128>}]} {
    %c0 = arith.constant 0 : index
    %c0_0 = arith.constant 0 : index
    %0 = vector.load %arg1[%c0, %c0_0] : memref<8x128xf32, #tpu.memory_space<vmem>>, vector<8x128xf32>
    %c0_1 = arith.constant 0 : index
    %c0_2 = arith.constant 0 : index
    %1 = vector.load %arg2[%c0_1, %c0_2] : memref<128x128xf32, #tpu.memory_space<vmem>>, vector<128x128xf32>
    %cst = arith.constant dense<0.000000e+00> : vector<8x128xf32>
    %2 = tpu.matmul %0, %1, %cst {dimension_numbers = #tpu.dot_dimension_numbers<[1], [0], [0], [1], [0, 0, 1, 1], [], []>} : vector<8x128xf32>, vector<128x128xf32>, vector<8x128xf32> -> vector<8x128xf32>
    %cst_3 = arith.constant 0.000000e+00 : f32
    %3 = vector.broadcast %cst_3 : f32 to vector<8x128xf32>
    %4 = arith.maximumf %2, %3 : vector<8x128xf32>
    %c0_4 = arith.constant 0 : index
    %c0_5 = arith.constant 0 : index
    %5 = vector.load %arg3[%c0_4, %c0_5] : memref<128x128xf32, #tpu.memory_space<vmem>>, vector<128x128xf32>
    %cst_6 = arith.constant dense<0.000000e+00> : vector<8x128xf32>
    %6 = tpu.matmul %4, %5, %cst_6 {dimension_numbers = #tpu.dot_dimension_numbers<[1], [0], [0], [1], [0, 0, 1, 1], [], []>} : vector<8x128xf32>, vector<128x128xf32>, vector<8x128xf32> -> vector<8x128xf32>
    %c0_7 = arith.constant 0 : index
    %c0_8 = arith.constant 0 : index
    %7 = vector.load %arg4[%c0_7, %c0_8] : memref<8x128xf32, #tpu.memory_space<vmem>>, vector<8x128xf32>
    tpu.vector_store %arg4[%c0_7, %c0_8], %6 {strides = array<i32>} : memref<8x128xf32, #tpu.memory_space<vmem>>, vector<8x128xf32>,
    return
  }
  func.func @transform_0(%arg0: i32) -> (i32, i32) {
    %c0_i32 = arith.constant 0 : i32
    %c0_i32_0 = arith.constant 0 : i32
    return %arg0, %c0_i32 : i32, i32
  }
  func.func @transform_1(%arg0: i32) -> (i32, i32) {
    %c0_i32 = arith.constant 0 : i32
    %c0_i32_0 = arith.constant 0 : i32
    %c0_i32_1 = arith.constant 0 : i32
    return %c0_i32, %c0_i32_0 : i32, i32
  }
  func.func @transform_2(%arg0: i32) -> (i32, i32) {
    %c0_i32 = arith.constant 0 : i32
    %c0_i32_0 = arith.constant 0 : i32
    %c0_i32_1 = arith.constant 0 : i32
    return %c0_i32, %c0_i32_0 : i32, i32
  }
  func.func @transform_3(%arg0: i32) -> (i32, i32) {
    %c0_i32 = arith.constant 0 : i32
    %c0_i32_0 = arith.constant 0 : i32
    return %arg0, %c0_i32 : i32, i32
  }
}

</mosaic_0001>

<bundles_post_ra>
// kernel: tpu_custom_call.1
= control target key start
LH: loop header
LB: loop body
LE: loop exit
PB: predicated region body
PF: predicated region fallthrough
CT: control target
= control target key end

     0   :  { %8 = vsyncpa [#allocation3], 0  ;;  %s517_s0 = inlined_call_operand.hbm [shape: f32[8,128], index: 0, kind: input, shape index: {}]   ;;  %s518_s1 = inlined_call_operand.hbm [shape: f32[128,128], index: 1, kind: input, shape index: {}]   ;;  %s519_s2 = inlined_call_operand.hbm [shape: f32[128,128], index: 2, kind: input, shape index: {}]   ;;  %s520_s3 = inlined_call_operand.hbm [shape: f32[8,128], index: 3, kind: output, shape index: {}]  }
   0x1   :  { %9 = vsyncpa [#allocation6], 0 }
   0x2   :  { %10 = vsyncpa [#allocation4], 0  ;;  %s443_s12 = smov [#allocation5]  }
   0x3   :  { %s26_s13 = sshll.u32 %s443_s12, 4  ;;  %s27_s13 = int_to_ptr.vmem [resolvable:$true] %s26_s13 }
   0x4   :  { %s365_s14 = scalar_lea.vmem %s27_s13, 2048  ;;  %p370_p1 = scmp.lt.s32.totalorder %s27_s13, %s27_s13 }
   0x5   :  { %p366_p0 = scmp.ne.s32.totalorder %s27_s13, %s365_s14  ;;  %p371_p2 = scmp.lt.s32.totalorder %s365_s14, %s365_s14 }
   0x7   :  { %p372_p3 = por %p371_p2, %p370_p1 }
   0x9   :  { %p373_p4 = pnand %p372_p3, %p366_p0 }
   0xb   :  { %376 = shalt.err (!%p373_p4)
}
   0xc   :  { %s444_s15 = smov 128   ;;  %s445_s16 = smov 8  }
   0xd   :  { %32 = dma.hbm_to_vmem [thread:$0]  %s518_s1, 2048, %s27_s13, [#allocation6], %s444_s15, %s444_s15, %s445_s16  }
   0xe   :  { %s446_s19 = smov [#allocation2]   ;;  %s447_s21 = smov [#allocation7]  }
   0xf   :  { %s17_s20 = sshll.u32 %s446_s19, 4  ;;  %s38_s22 = sshll.u32 %s447_s21, 4  ;;  %s18_s20 = int_to_ptr.vmem [resolvable:$true] %s17_s20  ;;  %s39_s22 = int_to_ptr.vmem [resolvable:$true] %s38_s22 }
  0x10   :  { %s385_s23 = scalar_lea.vmem %s18_s20, 128  ;;  %p390_p6 = scmp.lt.s32.totalorder %s18_s20, %s18_s20 }
  0x11   :  { %p386_p5 = scmp.ne.s32.totalorder %s18_s20, %s385_s23  ;;  %p391_p7 = scmp.lt.s32.totalorder %s385_s23, %s385_s23 }
  0x13   :  { %p392_p8 = por %p391_p7, %p390_p6 }
  0x15   :  { %p393_p9 = pnand %p392_p8, %p386_p5 }
  0x17   :  { %396 = shalt.err (!%p393_p9)
}
  0x18   :  { %20 = dma.hbm_to_vmem [thread:$0]  %s517_s0, 128, %s18_s20, [#allocation3]  }
  0x19   :  { %s405_s26 = scalar_lea.vmem %s39_s22, 2048  ;;  %p410_p11 = scmp.lt.s32.totalorder %s39_s22, %s39_s22 }
  0x1a   :  { %p406_p10 = scmp.ne.s32.totalorder %s39_s22, %s405_s26  ;;  %p411_p12 = scmp.lt.s32.totalorder %s405_s26, %s405_s26 }
  0x1c   :  { %p412_p13 = por %p411_p12, %p410_p11 }
  0x1e   :  { %p413_p0 = pnand %p412_p13, %p406_p10 }
  0x20   :  { %416 = shalt.err (!%p413_p0)
}
  0x21   :  { %44 = dma.hbm_to_vmem [thread:$0]  %s519_s2, 2048, %s39_s22, [#allocation6], %s444_s15, %s444_s15, %s445_s16  }
  0x22   :  { %437 = dma.done.wait [#allocation3], 128  }
  0x23   :  { %438 = vsyncadd [#allocation3], 4294967168 }
  0x24   :  { %439 = dma.done.wait [#allocation6], 4096  }
  0x25   :  { %440 = vsyncadd [#allocation6], 4294963200  ;;  %v448_v0 = vmov 0.0   ;;  %vm449_vm0 = vmmov 0   ;;  %v70_v1 = vld [vmem:[#allocation5 + $0x78] sm:$0xff]  ;;  %v69_v2 = vld [vmem:[#allocation5 + $0x70] sm:$0xff] }
  0x26   :  { %279 = vmatprep.subr.mxu0 %v448_v0  ;;  %311 = vmatprep.mubr.msk.f32.mxu0 %vm449_vm0, %v448_v0  ;;  %v68_v3 = vld [vmem:[#allocation5 + $0x68] sm:$0xff]  ;;  %v67_v4 = vld [vmem:[#allocation5 + $0x60] sm:$0xff]  ;;  %v157_v5 = vld [vmem:[#allocation7 + $0x78] sm:$0xff]  ;;  %s450_s0 = smov [#allocation8]  }
  0x27   :  { %314 = vmatprep.subr.mxu1 %v448_v0  ;;  %346 = vmatprep.mubr.msk.f32.mxu1 %vm449_vm0, %v448_v0  ;;  %v66_v6 = vld [vmem:[#allocation5 + $0x58] sm:$0xff]  ;;  %v156_v7 = vld [vmem:[#allocation7 + $0x70] sm:$0xff]  ;;  %v155_v8 = vld [vmem:[#allocation7 + $0x68] sm:$0xff]  ;;  %s235_s2 = sshll.u32 %s450_s0, 4  ;;  %s236_s2 = int_to_ptr.vmem [resolvable:$true] %s235_s2 }
  0x28   :  { %280 = vmatpush3.msra.mxu0 %v70_v1  ;;  %315 = vmatpush3.msra.mxu1 %v157_v5  ;;  %v65_v9 = vld [vmem:[#allocation5 + $0x50] sm:$0xff]  ;;  %v154_v10 = vld [vmem:[#allocation7 + $0x60] sm:$0xff]  ;;  %v64_v11 = vld [vmem:[#allocation5 + $0x48] sm:$0xff]  ;;  %s417_s28 = scalar_lea.vmem %s236_s2, 128  ;;  %p422_p2 = scmp.lt.s32.totalorder %s236_s2, %s236_s2 }
  0x29   :  { %281 = vmatprep.subr.mxu0 %v448_v0  ;;  %316 = vmatprep.subr.mxu1 %v448_v0  ;;  %v153_v12 = vld [vmem:[#allocation7 + $0x58] sm:$0xff]  ;;  %v63_v13 = vld [vmem:[#allocation5 + $0x40] sm:$0xff]  ;;  %v152_v14 = vld [vmem:[#allocation7 + $0x50] sm:$0xff]  ;;  %p418_p1 = scmp.ne.s32.totalorder %s236_s2, %s417_s28  ;;  %p423_p3 = scmp.lt.s32.totalorder %s417_s28, %s417_s28 }
  0x2a   :  { %282 = vmatpush3.msra.mxu0 %v69_v2  ;;  %317 = vmatpush3.msra.mxu1 %v156_v7  ;;  %v62_v15 = vld [vmem:[#allocation5 + $0x38] sm:$0xff]  ;;  %v151_v16 = vld [vmem:[#allocation7 + $0x48] sm:$0xff]  ;;  %v61_v17 = vld [vmem:[#allocation5 + $0x30] sm:$0xff] }
  0x2b   :  { %283 = vmatprep.subr.mxu0 %v448_v0  ;;  %318 = vmatprep.subr.mxu1 %v448_v0  ;;  %v150_v18 = vld [vmem:[#allocation7 + $0x40] sm:$0xff]  ;;  %v60_v19 = vld [vmem:[#allocation5 + $0x28] sm:$0xff]  ;;  %v149_v20 = vld [vmem:[#allocation7 + $0x38] sm:$0xff]  ;;  %p424_p4 = por %p423_p3, %p422_p2 }
  0x2c   :  { %284 = vmatpush3.msra.mxu0 %v68_v3  ;;  %319 = vmatpush3.msra.mxu1 %v155_v8  ;;  %v59_v21 = vld [vmem:[#allocation5 + $0x20] sm:$0xff]  ;;  %v148_v22 = vld [vmem:[#allocation7 + $0x30] sm:$0xff]  ;;  %v58_v23 = vld [vmem:[#allocation5 + $0x18] sm:$0xff] }
  0x2d   :  { %285 = vmatprep.subr.mxu0 %v448_v0  ;;  %320 = vmatprep.subr.mxu1 %v448_v0  ;;  %v147_v24 = vld [vmem:[#allocation7 + $0x28] sm:$0xff]  ;;  %v57_v25 = vld [vmem:[#allocation5 + $0x10] sm:$0xff]  ;;  %v146_v26 = vld [vmem:[#allocation7 + $0x20] sm:$0xff]  ;;  %p425_p5 = pnand %p424_p4, %p418_p1 }
  0x2e   :  { %286 = vmatpush3.msra.mxu0 %v67_v4  ;;  %321 = vmatpush3.msra.mxu1 %v154_v10  ;;  %v56_v27 = vld [vmem:[#allocation5 + $0x8] sm:$0xff]  ;;  %v145_v28 = vld [vmem:[#allocation7 + $0x18] sm:$0xff]  ;;  %v55_v29 = vld [vmem:[#allocation5] sm:$0xff] }
  0x2f   :  { %287 = vmatprep.subr.mxu0 %v448_v0  ;;  %322 = vmatprep.subr.mxu1 %v448_v0  ;;  %v54_v30 = vld [vmem:[#allocation2] sm:$0xff]  ;;  %v144_v31 = vld [vmem:[#allocation7 + $0x10] sm:$0xff]  ;;  %v143_v32 = vld [vmem:[#allocation7 + $0x8] sm:$0xff] }
  0x30   :  { %288 = vmatpush3.msra.mxu0 %v66_v6  ;;  %323 = vmatpush3.msra.mxu1 %v153_v12  ;;  %v142_v33 = vld [vmem:[#allocation7] sm:$0xff] }
  0x31   :  { %289 = vmatprep.subr.mxu0 %v448_v0  ;;  %324 = vmatprep.subr.mxu1 %v448_v0 }
  0x32   :  { %290 = vmatpush3.msra.mxu0 %v65_v9  ;;  %325 = vmatpush3.msra.mxu1 %v152_v14 }
  0x33   :  { %291 = vmatprep.subr.mxu0 %v448_v0  ;;  %326 = vmatprep.subr.mxu1 %v448_v0 }
  0x34   :  { %292 = vmatpush3.msra.mxu0 %v64_v11  ;;  %327 = vmatpush3.msra.mxu1 %v151_v16 }
  0x35   :  { %293 = vmatprep.subr.mxu0 %v448_v0  ;;  %328 = vmatprep.subr.mxu1 %v448_v0 }
  0x36   :  { %294 = vmatpush3.msra.mxu0 %v63_v13  ;;  %329 = vmatpush3.msra.mxu1 %v150_v18 }
  0x37   :  { %295 = vmatprep.subr.mxu0 %v448_v0  ;;  %330 = vmatprep.subr.mxu1 %v448_v0 }
  0x38   :  { %296 = vmatpush3.msra.mxu0 %v62_v15  ;;  %331 = vmatpush3.msra.mxu1 %v149_v20 }
  0x39   :  { %297 = vmatprep.subr.mxu0 %v448_v0  ;;  %332 = vmatprep.subr.mxu1 %v448_v0 }
  0x3a   :  { %298 = vmatpush3.msra.mxu0 %v61_v17  ;;  %333 = vmatpush3.msra.mxu1 %v148_v22 }
  0x3b   :  { %299 = vmatprep.subr.mxu0 %v448_v0  ;;  %334 = vmatprep.subr.mxu1 %v448_v0 }
  0x3c   :  { %300 = vmatpush3.msra.mxu0 %v60_v19  ;;  %335 = vmatpush3.msra.mxu1 %v147_v24 }
  0x3d   :  { %301 = vmatprep.subr.mxu0 %v448_v0  ;;  %336 = vmatprep.subr.mxu1 %v448_v0 }
  0x3e   :  { %302 = vmatpush3.msra.mxu0 %v59_v21  ;;  %337 = vmatpush3.msra.mxu1 %v146_v26 }
  0x3f   :  { %303 = vmatprep.subr.mxu0 %v448_v0  ;;  %338 = vmatprep.subr.mxu1 %v448_v0 }
  0x40   :  { %304 = vmatpush3.msra.mxu0 %v58_v23  ;;  %339 = vmatpush3.msra.mxu1 %v145_v28 }
  0x41   :  { %305 = vmatprep.subr.mxu0 %v448_v0  ;;  %340 = vmatprep.subr.mxu1 %v448_v0 }
  0x42   :  { %306 = vmatpush3.msra.mxu0 %v57_v25  ;;  %341 = vmatpush3.msra.mxu1 %v144_v31 }
  0x43   :  { %307 = vmatprep.subr.mxu0 %v448_v0  ;;  %342 = vmatprep.subr.mxu1 %v448_v0 }
  0x44   :  { %308 = vmatpush3.msra.mxu0 %v56_v27  ;;  %343 = vmatpush3.msra.mxu1 %v143_v32 }
  0x45   :  { %309 = vmatprep.subr.mxu0 %v448_v0  ;;  %344 = vmatprep.subr.mxu1 %v448_v0 }
  0x46   :  { %310 = vmatpush3.msra.mxu0 %v55_v29  ;;  %345 = vmatpush3.msra.mxu1 %v142_v33 }
  0x47   :  { %312 = vmatmul.mubr.f32.vlgmr.msra.gmra.mxu0 %v54_v30 }
 0x107   :  { %v137_v34 = vpop.f32.mrf.mxu0 }
 0x108   :  { %v141_v35 = vmax.f32 %v137_v34, 0.0 }
 0x109   :  { %v313_v36 = vpop.f32.mrf.mxu0 }
 0x10a   :  { %347 = vmatmul.mubr.f32.vlgmr.msra.gmra.mxu1 %v141_v35 }
 0x1ca   :  { %v224_v37 = vpop.f32.mrf.mxu1 }
 0x1cb   :  { %228 = vst [vmem:[#allocation8] sm:$0xff] %v224_v37 }
 0x1cc   :  { %v348_v38 = vpop.f32.mrf.mxu1 }
 0x1cd   :  { %428 = shalt.err (!%p425_p5)
}
 0x1ce   :  { %238 = dma.vmem_to_hbm [thread:$0]  %s236_s2, 128, %s520_s3, [#allocation4]  }
 0x1cf   :  { %441 = dma.done.wait [#allocation4], 128  }
 0x1d0   :  { %442 = vsyncadd [#allocation4], 4294967168 }
 0x1d1   :  { %242 = vsyncpa [#allocation3], 1 }
 0x1d2   :  { %243 = vsyncpa [#allocation6], 1 }
 0x1d3   :  { %244 = vsyncpa [#allocation4], 1 }

// kernel: tpu_custom_call.1
= control target key start
LH: loop header
LB: loop body
LE: loop exit
PB: predicated region body
PF: predicated region fallthrough
CT: control target
= control target key end

     0   :  { %8 = vsyncpa [#allocation3], 0  ;;  %s517_s0 = inlined_call_operand.hbm [shape: f32[8,128], index: 0, kind: input, shape index: {}]   ;;  %s518_s1 = inlined_call_operand.hbm [shape: f32[128,128], index: 1, kind: input, shape index: {}]   ;;  %s519_s2 = inlined_call_operand.hbm [shape: f32[128,128], index: 2, kind: input, shape index: {}]   ;;  %s520_s3 = inlined_call_operand.hbm [shape: f32[8,128], index: 3, kind: output, shape index: {}]  }
   0x1   :  { %9 = vsyncpa [#allocation6], 0 }
   0x2   :  { %10 = vsyncpa [#allocation4], 0  ;;  %s443_s12 = smov [#allocation5]  }
   0x3   :  { %s26_s13 = sshll.u32 %s443_s12, 4  ;;  %s27_s13 = int_to_ptr.vmem [resolvable:$true] %s26_s13 }
   0x4   :  { %s365_s14 = scalar_lea.vmem %s27_s13, 2048  ;;  %p370_p1 = scmp.lt.s32.totalorder %s27_s13, %s27_s13 }
   0x5   :  { %p366_p0 = scmp.ne.s32.totalorder %s27_s13, %s365_s14  ;;  %p371_p2 = scmp.lt.s32.totalorder %s365_s14, %s365_s14 }
   0x7   :  { %p372_p3 = por %p371_p2, %p370_p1 }
   0x9   :  { %p373_p4 = pnand %p372_p3, %p366_p0 }
   0xb   :  { %376 = shalt.err (!%p373_p4)
}
   0xc   :  { %s444_s15 = smov 128   ;;  %s445_s16 = smov 8  }
   0xd   :  { %32 = dma.hbm_to_vmem [thread:$0]  %s518_s1, 2048, %s27_s13, [#allocation6], %s444_s15, %s444_s15, %s445_s16  }
   0xe   :  { %s446_s19 = smov [#allocation2]   ;;  %s447_s21 = smov [#allocation7]  }
   0xf   :  { %s17_s20 = sshll.u32 %s446_s19, 4  ;;  %s38_s22 = sshll.u32 %s447_s21, 4  ;;  %s18_s20 = int_to_ptr.vmem [resolvable:$true] %s17_s20  ;;  %s39_s22 = int_to_ptr.vmem [resolvable:$true] %s38_s22 }
  0x10   :  { %s385_s23 = scalar_lea.vmem %s18_s20, 128  ;;  %p390_p6 = scmp.lt.s32.totalorder %s18_s20, %s18_s20 }
  0x11   :  { %p386_p5 = scmp.ne.s32.totalorder %s18_s20, %s385_s23  ;;  %p391_p7 = scmp.lt.s32.totalorder %s385_s23, %s385_s23 }
  0x13   :  { %p392_p8 = por %p391_p7, %p390_p6 }
  0x15   :  { %p393_p9 = pnand %p392_p8, %p386_p5 }
  0x17   :  { %396 = shalt.err (!%p393_p9)
}
  0x18   :  { %20 = dma.hbm_to_vmem [thread:$0]  %s517_s0, 128, %s18_s20, [#allocation3]  }
  0x19   :  { %s405_s26 = scalar_lea.vmem %s39_s22, 2048  ;;  %p410_p11 = scmp.lt.s32.totalorder %s39_s22, %s39_s22 }
  0x1a   :  { %p406_p10 = scmp.ne.s32.totalorder %s39_s22, %s405_s26  ;;  %p411_p12 = scmp.lt.s32.totalorder %s405_s26, %s405_s26 }
  0x1c   :  { %p412_p13 = por %p411_p12, %p410_p11 }
  0x1e   :  { %p413_p0 = pnand %p412_p13, %p406_p10 }
  0x20   :  { %416 = shalt.err (!%p413_p0)
}
  0x21   :  { %44 = dma.hbm_to_vmem [thread:$0]  %s519_s2, 2048, %s39_s22, [#allocation6], %s444_s15, %s444_s15, %s445_s16  }
  0x22   :  { %437 = dma.done.wait [#allocation3], 128  }
  0x23   :  { %438 = vsyncadd [#allocation3], 4294967168 }
  0x24   :  { %439 = dma.done.wait [#allocation6], 4096  }
  0x25   :  { %440 = vsyncadd [#allocation6], 4294963200  ;;  %v448_v0 = vmov 0.0   ;;  %vm449_vm0 = vmmov 0   ;;  %v70_v1 = vld [vmem:[#allocation5 + $0x78] sm:$0xff]  ;;  %v69_v2 = vld [vmem:[#allocation5 + $0x70] sm:$0xff] }
  0x26   :  { %279 = vmatprep.subr.mxu0 %v448_v0  ;;  %311 = vmatprep.mubr.msk.f32.mxu0 %vm449_vm0, %v448_v0  ;;  %v68_v3 = vld [vmem:[#allocation5 + $0x68] sm:$0xff]  ;;  %v67_v4 = vld [vmem:[#allocation5 + $0x60] sm:$0xff]  ;;  %v157_v5 = vld [vmem:[#allocation7 + $0x78] sm:$0xff]  ;;  %s450_s0 = smov [#allocation8]  }
  0x27   :  { %314 = vmatprep.subr.mxu1 %v448_v0  ;;  %346 = vmatprep.mubr.msk.f32.mxu1 %vm449_vm0, %v448_v0  ;;  %v66_v6 = vld [vmem:[#allocation5 + $0x58] sm:$0xff]  ;;  %v156_v7 = vld [vmem:[#allocation7 + $0x70] sm:$0xff]  ;;  %v155_v8 = vld [vmem:[#allocation7 + $0x68] sm:$0xff]  ;;  %s235_s2 = sshll.u32 %s450_s0, 4  ;;  %s236_s2 = int_to_ptr.vmem [resolvable:$true] %s235_s2 }
  0x28   :  { %280 = vmatpush3.msra.mxu0 %v70_v1  ;;  %315 = vmatpush3.msra.mxu1 %v157_v5  ;;  %v65_v9 = vld [vmem:[#allocation5 + $0x50] sm:$0xff]  ;;  %v154_v10 = vld [vmem:[#allocation7 + $0x60] sm:$0xff]  ;;  %v64_v11 = vld [vmem:[#allocation5 + $0x48] sm:$0xff]  ;;  %s417_s28 = scalar_lea.vmem %s236_s2, 128  ;;  %p422_p2 = scmp.lt.s32.totalorder %s236_s2, %s236_s2 }
  0x29   :  { %281 = vmatprep.subr.mxu0 %v448_v0  ;;  %316 = vmatprep.subr.mxu1 %v448_v0  ;;  %v153_v12 = vld [vmem:[#allocation7 + $0x58] sm:$0xff]  ;;  %v63_v13 = vld [vmem:[#allocation5 + $0x40] sm:$0xff]  ;;  %v152_v14 = vld [vmem:[#allocation7 + $0x50] sm:$0xff]  ;;  %p418_p1 = scmp.ne.s32.totalorder %s236_s2, %s417_s28  ;;  %p423_p3 = scmp.lt.s32.totalorder %s417_s28, %s417_s28 }
  0x2a   :  { %282 = vmatpush3.msra.mxu0 %v69_v2  ;;  %317 = vmatpush3.msra.mxu1 %v156_v7  ;;  %v62_v15 = vld [vmem:[#allocation5 + $0x38] sm:$0xff]  ;;  %v151_v16 = vld [vmem:[#allocation7 + $0x48] sm:$0xff]  ;;  %v61_v17 = vld [vmem:[#allocation5 + $0x30] sm:$0xff] }
  0x2b   :  { %283 = vmatprep.subr.mxu0 %v448_v0  ;;  %318 = vmatprep.subr.mxu1 %v448_v0  ;;  %v150_v18 = vld [vmem:[#allocation7 + $0x40] sm:$0xff]  ;;  %v60_v19 = vld [vmem:[#allocation5 + $0x28] sm:$0xff]  ;;  %v149_v20 = vld [vmem:[#allocation7 + $0x38] sm:$0xff]  ;;  %p424_p4 = por %p423_p3, %p422_p2 }
  0x2c   :  { %284 = vmatpush3.msra.mxu0 %v68_v3  ;;  %319 = vmatpush3.msra.mxu1 %v155_v8  ;;  %v59_v21 = vld [vmem:[#allocation5 + $0x20] sm:$0xff]  ;;  %v148_v22 = vld [vmem:[#allocation7 + $0x30] sm:$0xff]  ;;  %v58_v23 = vld [vmem:[#allocation5 + $0x18] sm:$0xff] }
  0x2d   :  { %285 = vmatprep.subr.mxu0 %v448_v0  ;;  %320 = vmatprep.subr.mxu1 %v448_v0  ;;  %v147_v24 = vld [vmem:[#allocation7 + $0x28] sm:$0xff]  ;;  %v57_v25 = vld [vmem:[#allocation5 + $0x10] sm:$0xff]  ;;  %v146_v26 = vld [vmem:[#allocation7 + $0x20] sm:$0xff]  ;;  %p425_p5 = pnand %p424_p4, %p418_p1 }
  0x2e   :  { %286 = vmatpush3.msra.mxu0 %v67_v4  ;;  %321 = vmatpush3.msra.mxu1 %v154_v10  ;;  %v56_v27 = vld [vmem:[#allocation5 + $0x8] sm:$0xff]  ;;  %v145_v28 = vld [vmem:[#allocation7 + $0x18] sm:$0xff]  ;;  %v55_v29 = vld [vmem:[#allocation5] sm:$0xff] }
  0x2f   :  { %287 = vmatprep.subr.mxu0 %v448_v0  ;;  %322 = vmatprep.subr.mxu1 %v448_v0  ;;  %v54_v30 = vld [vmem:[#allocation2] sm:$0xff]  ;;  %v144_v31 = vld [vmem:[#allocation7 + $0x10] sm:$0xff]  ;;  %v143_v32 = vld [vmem:[#allocation7 + $0x8] sm:$0xff] }
  0x30   :  { %288 = vmatpush3.msra.mxu0 %v66_v6  ;;  %323 = vmatpush3.msra.mxu1 %v153_v12  ;;  %v142_v33 = vld [vmem:[#allocation7] sm:$0xff] }
  0x31   :  { %289 = vmatprep.subr.mxu0 %v448_v0  ;;  %324 = vmatprep.subr.mxu1 %v448_v0 }
  0x32   :  { %290 = vmatpush3.msra.mxu0 %v65_v9  ;;  %325 = vmatpush3.msra.mxu1 %v152_v14 }
  0x33   :  { %291 = vmatprep.subr.mxu0 %v448_v0  ;;  %326 = vmatprep.subr.mxu1 %v448_v0 }
  0x34   :  { %292 = vmatpush3.msra.mxu0 %v64_v11  ;;  %327 = vmatpush3.msra.mxu1 %v151_v16 }
  0x35   :  { %293 = vmatprep.subr.mxu0 %v448_v0  ;;  %328 = vmatprep.subr.mxu1 %v448_v0 }
  0x36   :  { %294 = vmatpush3.msra.mxu0 %v63_v13  ;;  %329 = vmatpush3.msra.mxu1 %v150_v18 }
  0x37   :  { %295 = vmatprep.subr.mxu0 %v448_v0  ;;  %330 = vmatprep.subr.mxu1 %v448_v0 }
  0x38   :  { %296 = vmatpush3.msra.mxu0 %v62_v15  ;;  %331 = vmatpush3.msra.mxu1 %v149_v20 }
  0x39   :  { %297 = vmatprep.subr.mxu0 %v448_v0  ;;  %332 = vmatprep.subr.mxu1 %v448_v0 }
  0x3a   :  { %298 = vmatpush3.msra.mxu0 %v61_v17  ;;  %333 = vmatpush3.msra.mxu1 %v148_v22 }
  0x3b   :  { %299 = vmatprep.subr.mxu0 %v448_v0  ;;  %334 = vmatprep.subr.mxu1 %v448_v0 }
  0x3c   :  { %300 = vmatpush3.msra.mxu0 %v60_v19  ;;  %335 = vmatpush3.msra.mxu1 %v147_v24 }
  0x3d   :  { %301 = vmatprep.subr.mxu0 %v448_v0  ;;  %336 = vmatprep.subr.mxu1 %v448_v0 }
  0x3e   :  { %302 = vmatpush3.msra.mxu0 %v59_v21  ;;  %337 = vmatpush3.msra.mxu1 %v146_v26 }
  0x3f   :  { %303 = vmatprep.subr.mxu0 %v448_v0  ;;  %338 = vmatprep.subr.mxu1 %v448_v0 }
  0x40   :  { %304 = vmatpush3.msra.mxu0 %v58_v23  ;;  %339 = vmatpush3.msra.mxu1 %v145_v28 }
  0x41   :  { %305 = vmatprep.subr.mxu0 %v448_v0  ;;  %340 = vmatprep.subr.mxu1 %v448_v0 }
  0x42   :  { %306 = vmatpush3.msra.mxu0 %v57_v25  ;;  %341 = vmatpush3.msra.mxu1 %v144_v31 }
  0x43   :  { %307 = vmatprep.subr.mxu0 %v448_v0  ;;  %342 = vmatprep.subr.mxu1 %v448_v0 }
  0x44   :  { %308 = vmatpush3.msra.mxu0 %v56_v27  ;;  %343 = vmatpush3.msra.mxu1 %v143_v32 }
  0x45   :  { %309 = vmatprep.subr.mxu0 %v448_v0  ;;  %344 = vmatprep.subr.mxu1 %v448_v0 }
  0x46   :  { %310 = vmatpush3.msra.mxu0 %v55_v29  ;;  %345 = vmatpush3.msra.mxu1 %v142_v33 }
  0x47   :  { %312 = vmatmul.mubr.f32.vlgmr.msra.gmra.mxu0 %v54_v30 }
 0x107   :  { %v137_v34 = vpop.f32.mrf.mxu0 }
 0x108   :  { %v141_v35 = vmax.f32 %v137_v34, 0.0 }
 0x109   :  { %v313_v36 = vpop.f32.mrf.mxu0 }
 0x10a   :  { %347 = vmatmul.mubr.f32.vlgmr.msra.gmra.mxu1 %v141_v35 }
 0x1ca   :  { %v224_v37 = vpop.f32.mrf.mxu1 }
 0x1cb   :  { %228 = vst [vmem:[#allocation8] sm:$0xff] %v224_v37 }
 0x1cc   :  { %v348_v38 = vpop.f32.mrf.mxu1 }
 0x1cd   :  { %428 = shalt.err (!%p425_p5)
}
 0x1ce   :  { %238 = dma.vmem_to_hbm [thread:$0]  %s236_s2, 128, %s520_s3, [#allocation4]  }
 0x1cf   :  { %441 = dma.done.wait [#allocation4], 128  }
 0x1d0   :  { %442 = vsyncadd [#allocation4], 4294967168 }
 0x1d1   :  { %242 = vsyncpa [#allocation3], 1 }
 0x1d2   :  { %243 = vsyncpa [#allocation6], 1 }
 0x1d3   :  { %244 = vsyncpa [#allocation4], 1 }

</bundles_post_ra>
